<compile_context>
chip_gen: v6e
topology: v6e:2x2x1
jax: 0.10.0
libtpu: 0.0.40
codegen_flags: <defaults>
</compile_context>

<pallas_src>
import jax
import jax.numpy as jnp
from jax.experimental import pallas as pl
from jax.experimental.pallas import tpu as pltpu


def linear_relu_kernel_t(w_ref, b_ref, x_ref, o_ref):
    # w_ref: (IN, OUT) f32 in SMEM      (pre-transposed PyTorch weight)
    # b_ref: (OUT,)    f32 in SMEM
    # x_ref: (IN, TB)  f32 in VMEM      (batch on the 128-lane axis)
    # o_ref: (OUT, TB) f32 in VMEM      (batch on the 128-lane axis)
    in_features = w_ref.shape[0]    # static (= 2)
    out_features = w_ref.shape[1]   # static (= 3)

    # Load the IN rows of x once: each is a lane-dense (1, TB) slab.
    x_rows = [x_ref[k : k + 1, :] for k in range(in_features)]

    # out^T[n, :] = w[0,n]*x^T[0,:] + w[1,n]*x^T[1,:] + b[n]   (scalar * vector)
    for n in range(out_features):              # static unroll (OUT = 3)
        acc = x_rows[0] * w_ref[0, n]
        for k in range(1, in_features):        # static unroll (IN = 2)
            acc = acc + x_rows[k] * w_ref[k, n]
        o_ref[n : n + 1, :] = jnp.maximum(acc + b_ref[n], 0.0).astype(o_ref.dtype)


def linear_relu(x, w_in_out, bias, *, batch_block=8192):
    """x: (B, IN) f32; w_in_out: (IN, OUT) f32 (pre-transposed PyTorch weight);
    bias: (OUT,) f32. Returns ReLU(x @ W^T + b) with shape (B, OUT)."""
    B, IN = x.shape
    IN_w, OUT = w_in_out.shape
    assert IN == IN_w

    # Batch-minor layout for the kernel: batch on the lane axis.
    xT = x.T  # (IN, B)
    smem = pltpu.MemorySpace.SMEM
    vmem = pltpu.MemorySpace.VMEM

    if B <= batch_block:
        # Small batch (the test-scale case): gridless call, whole arrays land
        # in VMEM/SMEM once, no grid loop / pipelining overhead.
        outT = pl.pallas_call(
            linear_relu_kernel_t,
            out_shape=jax.ShapeDtypeStruct((OUT, B), x.dtype),
            in_specs=[
                pl.BlockSpec(memory_space=smem),   # weight (IN, OUT)
                pl.BlockSpec(memory_space=smem),   # bias (OUT,)
                pl.BlockSpec(memory_space=vmem),   # x^T (IN, B)
            ],
            out_specs=pl.BlockSpec(memory_space=vmem),
        )(w_in_out, bias, xT)
        return outT.T

    # Large batch: tile only the batch (lane) axis with a cdiv grid. Pad B up
    # to a multiple of batch_block in the wrapper (ragged tail is sliced off
    # afterwards); weight/bias stay SMEM-resident across all grid steps.
    num_blocks = pl.cdiv(B, batch_block)
    Bp = num_blocks * batch_block
    if Bp != B:
        xT = jnp.pad(xT, ((0, 0), (0, Bp - B)))

    outT = pl.pallas_call(
        linear_relu_kernel_t,
        out_shape=jax.ShapeDtypeStruct((OUT, Bp), x.dtype),
        grid=(num_blocks,),
        in_specs=[
            pl.BlockSpec(memory_space=smem),                     # weight, untiled
            pl.BlockSpec(memory_space=smem),                     # bias, untiled
            pl.BlockSpec((IN, batch_block), lambda i: (0, i)),   # x^T tile
        ],
        out_specs=pl.BlockSpec((OUT, batch_block), lambda i: (0, i)),
        compiler_params=pltpu.CompilerParams(
            dimension_semantics=("parallel",)),  # megacore sharding on v7x
    )(w_in_out, bias, xT)
    return outT[:, :B].T


def init_params(key, in_features=2, out_features=3):
    # Mirror torch.nn.Linear default init: U(-1/sqrt(fan_in), 1/sqrt(fan_in)).
    # Weight is generated in PyTorch's (OUT, IN) layout and transposed ONCE
    # here (setup time), so the per-forward call pays no transpose for it.
    kw, kb = jax.random.split(key)
    bound = 1.0 / jnp.sqrt(jnp.float32(in_features))
    weight_pt = jax.random.uniform(
        kw, (out_features, in_features), jnp.float32, -bound, bound)
    w_in_out = jnp.asarray(weight_pt.T)                   # (IN, OUT)
    bias = jax.random.uniform(
        kb, (out_features,), jnp.float32, -bound, bound)  # (OUT,)
    return w_in_out, bias


if __name__ == "__main__":
    key = jax.random.PRNGKey(0)
    k_x, k_p, k_xl = jax.random.split(key, 3)

    IN, OUT = 2, 3
    w_in_out, bias = init_params(k_p, IN, OUT)

    # --- Small batch (matches the original test scale): gridless path. ---
    B_small = 8
    x_small = jax.random.normal(k_x, (B_small, IN), dtype=jnp.float32)
    out_small = jax.block_until_ready(linear_relu(x_small, w_in_out, bias))
    ref_small = jnp.maximum(x_small @ w_in_out + bias, 0.0)
    assert out_small.shape == (B_small, OUT)
    assert jnp.allclose(out_small, ref_small, atol=1e-5, rtol=1e-5)

    # --- Larger, ragged batch: exercises the cdiv-tiled lane-dense grid path. ---
    B_big = 20000  # not a multiple of batch_block -> wrapper pads, grid = 3
    x_big = jax.random.normal(k_xl, (B_big, IN), dtype=jnp.float32)
    out_big = jax.block_until_ready(
        linear_relu(x_big, w_in_out, bias, batch_block=8192))
    ref_big = jnp.maximum(x_big @ w_in_out + bias, 0.0)
    assert out_big.shape == (B_big, OUT)
    assert jnp.allclose(out_big, ref_big, atol=1e-5, rtol=1e-5)

    print("KERNEL_OK")
</pallas_src>

<mosaic_0001>
module attributes {stable_mosaic.version = 11 : i64} {
  func.func @linear_relu_kernel_t(%arg0: memref<2x3xf32, #tpu.memory_space<smem>>, %arg1: memref<3xf32, #tpu.memory_space<smem>>, %arg2: memref<2x8xf32, #tpu.memory_space<vmem>>, %arg3: memref<3x8xf32, #tpu.memory_space<vmem>>) attributes {dimension_semantics = [], scalar_prefetch = 0 : i64, scratch_operands = 0 : i64, tpu.core_type = #tpu.core_type<tc>} {
    %c0 = arith.constant 0 : index
    %c0_0 = arith.constant 0 : index
    %0 = vector.load %arg2[%c0, %c0_0] : memref<2x8xf32, #tpu.memory_space<vmem>>, vector<1x8xf32>
    %c1 = arith.constant 1 : index
    %c0_1 = arith.constant 0 : index
    %1 = vector.load %arg2[%c1, %c0_1] : memref<2x8xf32, #tpu.memory_space<vmem>>, vector<1x8xf32>
    %c0_2 = arith.constant 0 : index
    %c0_3 = arith.constant 0 : index
    %2 = memref.load %arg0[%c0_2, %c0_3] : memref<2x3xf32, #tpu.memory_space<smem>>
    %3 = vector.broadcast %2 : f32 to vector<1x8xf32>
    %4 = arith.mulf %0, %3 : vector<1x8xf32>
    %c1_4 = arith.constant 1 : index
    %c0_5 = arith.constant 0 : index
    %5 = memref.load %arg0[%c1_4, %c0_5] : memref<2x3xf32, #tpu.memory_space<smem>>
    %6 = vector.broadcast %5 : f32 to vector<1x8xf32>
    %7 = arith.mulf %1, %6 : vector<1x8xf32>
    %8 = arith.addf %4, %7 : vector<1x8xf32>
    %c0_6 = arith.constant 0 : index
    %9 = memref.load %arg1[%c0_6] : memref<3xf32, #tpu.memory_space<smem>>
    %10 = vector.broadcast %9 : f32 to vector<1x8xf32>
    %11 = arith.addf %8, %10 : vector<1x8xf32>
    %cst = arith.constant 0.000000e+00 : f32
    %12 = vector.broadcast %cst : f32 to vector<1x8xf32>
    %13 = arith.maximumf %11, %12 : vector<1x8xf32>
    %c0_7 = arith.constant 0 : index
    %c0_8 = arith.constant 0 : index
    %14 = vector.load %arg3[%c0_7, %c0_8] : memref<3x8xf32, #tpu.memory_space<vmem>>, vector<1x8xf32>
    tpu.vector_store %arg3[%c0_7, %c0_8], %13 {strides = array<i32>} : memref<3x8xf32, #tpu.memory_space<vmem>>, vector<1x8xf32>,
    %c0_9 = arith.constant 0 : index
    %c1_10 = arith.constant 1 : index
    %15 = memref.load %arg0[%c0_9, %c1_10] : memref<2x3xf32, #tpu.memory_space<smem>>
    %16 = vector.broadcast %15 : f32 to vector<1x8xf32>
    %17 = arith.mulf %0, %16 : vector<1x8xf32>
    %c1_11 = arith.constant 1 : index
    %c1_12 = arith.constant 1 : index
    %18 = memref.load %arg0[%c1_11, %c1_12] : memref<2x3xf32, #tpu.memory_space<smem>>
    %19 = vector.broadcast %18 : f32 to vector<1x8xf32>
    %20 = arith.mulf %1, %19 : vector<1x8xf32>
    %21 = arith.addf %17, %20 : vector<1x8xf32>
    %c1_13 = arith.constant 1 : index
    %22 = memref.load %arg1[%c1_13] : memref<3xf32, #tpu.memory_space<smem>>
    %23 = vector.broadcast %22 : f32 to vector<1x8xf32>
    %24 = arith.addf %21, %23 : vector<1x8xf32>
    %cst_14 = arith.constant 0.000000e+00 : f32
    %25 = vector.broadcast %cst_14 : f32 to vector<1x8xf32>
    %26 = arith.maximumf %24, %25 : vector<1x8xf32>
    %c1_15 = arith.constant 1 : index
    %c0_16 = arith.constant 0 : index
    %27 = vector.load %arg3[%c1_15, %c0_16] : memref<3x8xf32, #tpu.memory_space<vmem>>, vector<1x8xf32>
    tpu.vector_store %arg3[%c1_15, %c0_16], %26 {strides = array<i32>} : memref<3x8xf32, #tpu.memory_space<vmem>>, vector<1x8xf32>,
    %c0_17 = arith.constant 0 : index
    %c2 = arith.constant 2 : index
    %28 = memref.load %arg0[%c0_17, %c2] : memref<2x3xf32, #tpu.memory_space<smem>>
    %29 = vector.broadcast %28 : f32 to vector<1x8xf32>
    %30 = arith.mulf %0, %29 : vector<1x8xf32>
    %c1_18 = arith.constant 1 : index
    %c2_19 = arith.constant 2 : index
    %31 = memref.load %arg0[%c1_18, %c2_19] : memref<2x3xf32, #tpu.memory_space<smem>>
    %32 = vector.broadcast %31 : f32 to vector<1x8xf32>
    %33 = arith.mulf %1, %32 : vector<1x8xf32>
    %34 = arith.addf %30, %33 : vector<1x8xf32>
    %c2_20 = arith.constant 2 : index
    %35 = memref.load %arg1[%c2_20] : memref<3xf32, #tpu.memory_space<smem>>
    %36 = vector.broadcast %35 : f32 to vector<1x8xf32>
    %37 = arith.addf %34, %36 : vector<1x8xf32>
    %cst_21 = arith.constant 0.000000e+00 : f32
    %38 = vector.broadcast %cst_21 : f32 to vector<1x8xf32>
    %39 = arith.maximumf %37, %38 : vector<1x8xf32>
    %c2_22 = arith.constant 2 : index
    %c0_23 = arith.constant 0 : index
    %40 = vector.load %arg3[%c2_22, %c0_23] : memref<3x8xf32, #tpu.memory_space<vmem>>, vector<1x8xf32>
    tpu.vector_store %arg3[%c2_22, %c0_23], %39 {strides = array<i32>} : memref<3x8xf32, #tpu.memory_space<vmem>>, vector<1x8xf32>,
    return
  }
}

</mosaic_0001>

<bundles_post_ra>
// kernel: tpu_custom_call.1
= control target key start
LH: loop header
LB: loop body
LE: loop exit
PB: predicated region body
PF: predicated region fallthrough
CT: control target
= control target key end

     0   :  { %8 = vsyncpa [#allocation4], 0  ;;  %s190_s0 = inlined_call_operand.hbm [shape: f32[2,3], index: 0, kind: input, shape index: {}]   ;;  %s191_s1 = inlined_call_operand.vmem [shape: f32[3], index: 1, kind: input, shape index: {}]   ;;  %s192_s2 = inlined_call_operand.vmem [shape: f32[2,8], index: 2, kind: input, shape index: {}]   ;;  %s193_s3 = inlined_call_operand.hbm [shape: f32[3,8], index: 3, kind: output, shape index: {}]  }
   0x1   :  { %9 = vsyncpa [#allocation5], 0 }
   0x2   :  { %10 = vsyncpa [#allocation3], 0  ;;  %s25_s14 = sshll.u32 %s191_s1, 4  ;;  %s149_s15 = smov [#allocation2]   ;;  %s26_s14 = int_to_ptr.vmem [resolvable:$true] %s25_s14 }
   0x3   :  { %18 = dma.hbm_to_smem %s190_s0, 32, %s149_s15, [#allocation4]  }
   0x4   :  { %s111_s18 = scalar_lea.vmem %s26_s14, 16  ;;  %p116_p1 = scmp.lt.s32.totalorder %s26_s14, %s26_s14 }
   0x5   :  { %p112_p0 = scmp.ne.s32.totalorder %s26_s14, %s111_s18  ;;  %p117_p2 = scmp.lt.s32.totalorder %s111_s18, %s111_s18 }
   0x7   :  { %p118_p3 = por %p117_p2, %p116_p1 }
   0x9   :  { %p119_p4 = pnand %p118_p3, %p112_p0 }
   0xb   :  { %122 = shalt.err (!%p119_p4)
}
   0xc   :  { %s150_s19 = smov [#allocation6]  }
   0xd   :  { %28 = dma.vmem_to_smem %s26_s14, 16, %s150_s19, [#allocation5]  }
   0xe   :  { %143 = dma.done.wait [#allocation4], 32  }
   0xf   :  { %144 = vsyncadd [#allocation4], 4294967264 }
  0x10   :  { %145 = dma.done.wait [#allocation5], 16  }
  0x11   :  { %146 = vsyncadd [#allocation5], 4294967280 }
  0x12   :  { %37 = sfence }
  0x13   :  { %s40_s1 = sld [smem:[#allocation2]]  ;;  %v38_v0 = vld [vmem:[%s192_s2] sm:$0x1]  ;;  %v39_v1 = vld [vmem:[%s192_s2 + $0x1] sm:$0x1]  ;;  %vm51_vm0 = vcmask 57344  }
  0x14   :  { %s93_s20 = sld [smem:[#allocation2 + $0x80]]  ;;  %s151_s2 = smov [#allocation7]  }
  0x15   :  { %s47_s21 = sld [smem:[#allocation6]]  ;;  %s83_s4 = sshll.u32 %s151_s2, 4  ;;  %s84_s4 = int_to_ptr.vmem [resolvable:$true] %s83_s4 }
  0x16   :  { %s94_s22 = sld [smem:[#allocation2 + $0x1]]  ;;  %s123_s5 = scalar_lea.vmem %s84_s4, 64 }
  0x17   :  { %s95_s24 = sld [smem:[#allocation2 + $0x81]]  ;;  %p124_p5 = scmp.ne.s32.totalorder %s84_s4, %s123_s5 }
  0x18   :  { %s96_s27 = sld [smem:[#allocation6 + $0x1]]  ;;  %p128_p6 = scmp.lt.s32.totalorder %s84_s4, %s84_s4 }
  0x19   :  { %v41_v2 = vstv %s40_s1  ;;  %s97_s28 = sld [smem:[#allocation2 + $0x2]]  ;;  %p129_p7 = scmp.lt.s32.totalorder %s123_s5, %s123_s5 }
  0x1a   :  { %v42_v3 = vmul.f32 %v41_v2, %v38_v0  ;;  %v44_v4 = vstv %s93_s20  ;;  %s98_s29 = sld [smem:[#allocation2 + $0x82]] }
  0x1b   :  { %v45_v5 = vmul.f32 %v44_v4, %v39_v1  ;;  %s99_s30 = sld [smem:[#allocation6 + $0x2]]  ;;  %v48_v6 = vstv %s47_s21  ;;  %p130_p8 = por %p129_p7, %p128_p6 }
  0x1c   :  { %v54_v7 = vstv %s94_s22 }
  0x1d   :  { %v46_v8 = vadd.f32 %v45_v5, %v42_v3  ;;  %v55_v9 = vmul.f32 %v54_v7, %v38_v0  ;;  %v57_v10 = vstv %s95_s24  ;;  %p131_p9 = pnand %p130_p8, %p124_p5 }
  0x1e   :  { %v58_v11 = vmul.f32 %v57_v10, %v39_v1  ;;  %v61_v13 = vstv %s96_s27 }
  0x1f   :  { %v49_v12 = vadd.f32 %v48_v6, %v46_v8  ;;  %v66_v14 = vstv %s97_s28 }
  0x20   :  { %v59_v15 = vadd.f32 %v58_v11, %v55_v9  ;;  %v67_v16 = vmul.f32 %v66_v14, %v38_v0  ;;  %v69_v17 = vstv %s98_s29 }
  0x21   :  { %v50_v18 = vmax.f32 %v49_v12, 0.0  ;;  %v70_v19 = vmul.f32 %v69_v17, %v39_v1  ;;  %v73_v21 = vstv %s99_s30 }
  0x22   :  { %v62_v20 = vadd.f32 %v61_v13, %v59_v15 }
  0x23   :  { %52 = vst.msk [vmem:[#allocation7] sm:$0x1] %vm51_vm0, %v50_v18  ;;  %v71_v22 = vadd.f32 %v70_v19, %v67_v16 }
  0x24   :  { %v63_v23 = vmax.f32 %v62_v20, 0.0 }
  0x25   :  { %v74_v24 = vadd.f32 %v73_v21, %v71_v22 }
  0x26   :  { %64 = vst.msk [vmem:[#allocation7 + $0x1] sm:$0x1] %vm51_vm0, %v63_v23 }
  0x27   :  { %v75_v25 = vmax.f32 %v74_v24, 0.0 }
  0x29   :  { %76 = vst.msk [vmem:[#allocation7 + $0x2] sm:$0x1] %vm51_vm0, %v75_v25 }
  0x2a   :  { %134 = shalt.err (!%p131_p9)
}
  0x2b   :  { %86 = dma.vmem_to_hbm [thread:$0]  %s84_s4, 64, %s193_s3, [#allocation3]  }
  0x2c   :  { %147 = dma.done.wait [#allocation3], 64  }
  0x2d   :  { %148 = vsyncadd [#allocation3], 4294967232 }
  0x2e   :  { %90 = vsyncpa [#allocation3], 1 }
  0x2f   :  { %91 = vsyncpa [#allocation4], 1 }
  0x30   :  { %92 = vsyncpa [#allocation5], 1 }

</bundles_post_ra>
